<compile_context>
chip_gen: v7x
topology: tpu7x:2x2x1
jax: 0.10.0
libtpu: 0.0.40
codegen_flags: <defaults>
</compile_context>

<pallas_src>
import functools

import jax
import jax.numpy as jnp
import numpy as np
from jax.experimental import pallas as pl
from jax.experimental.pallas import tpu as pltpu


_BLOCK_BYTES_CAP = 8 << 20   # ~8 MiB per output block (x2 when double-buffered)
_MIN_GRID_STEPS = 4          # keep >= 4 steps for big tables (v7x: 2 TCs, 2 bufs)


# ---------------------------------------------------------------------------
# Kernels
# ---------------------------------------------------------------------------

def _rope_kernel_rowmajor(inv_freq_ref, out_ref, *, tile_n, offset):
    """Row-major layout: out block is (tile_n, dim), seq positions on sublanes.

    out[r, d] = (r + base) * inv_freq_full[d]; (row + base) is an exact f32
    integer sum, so the single multiply matches the f32 reference bitwise.
    """
    base = (pl.program_id(0) * tile_n + offset).astype(jnp.float32)     # scalar
    row = jax.lax.broadcasted_iota(jnp.int32, out_ref.shape, 0).astype(jnp.float32)
    out_ref[...] = (row + base) * inv_freq_ref[...]                     # (1,dim) bcast


def _rope_kernel_lanedense(lane_pos_ref, lane_freq_ref, out_ref, *, tile_r, k, offset):
    """Lane-dense layout for dim < 128 (dim divides 128).

    The (n, dim) table is viewed as (n*dim/128, 128); each 128-lane row packs
    k = 128//dim consecutive sequence positions.  Element (r, l) equals
    (seq = r*k + l//dim + offset) * inv_freq_full[l % dim].  The per-lane parts
    arrive as precomputed (1, 128) vectors; base + lane_pos is folded once per
    tile so the per-vreg work is iota/convert/mul/add/mul.
    """
    base = (pl.program_id(0) * (tile_r * k) + offset).astype(jnp.float32)
    base_lane = base + lane_pos_ref[...]                                # (1, 128)
    row = jax.lax.broadcasted_iota(jnp.int32, out_ref.shape, 0).astype(jnp.float32)
    out_ref[...] = (row * float(k) + base_lane) * lane_freq_ref[...]


# ---------------------------------------------------------------------------
# Tiling helpers
# ---------------------------------------------------------------------------

def _pick_tile_rows(total_rows, row_bytes, *, align=8,
                    block_bytes_cap=_BLOCK_BYTES_CAP, min_grid=_MIN_GRID_STEPS):
    """Power-of-two, 8-aligned row tile; the grid uses pl.cdiv (ragged last
    block is masked on writeback)."""
    if total_rows <= align:
        return total_rows                                  # one full-extent block
    budget_rows = max(align, block_bytes_cap // max(row_bytes, 1))
    target = min(budget_rows, pl.cdiv(total_rows, min_grid))
    target = max(target, align)
    tile = 1 << (int(target).bit_length() - 1)             # power-of-two floor
    return max(tile, align)


def _vmem_limit_bytes(block_bytes):
    # Double-buffered output block + tiny resident inputs + slack. Explicit so
    # multi-MiB tiles survive v5e's 16 MiB scoped default and stay well under
    # v7x's 64 MiB physical VMEM.
    return int(min(max(2 * block_bytes + (4 << 20), 16 << 20), 48 << 20))


# ---------------------------------------------------------------------------
# Wrapper (module forward)
# ---------------------------------------------------------------------------

def rotary_embedding(max_seq_len: int, dim: int, offset: int = 0):
    """Returns the (1, 1, max_seq_len, dim) float32 rotary angle table."""
    assert dim % 2 == 0, "RotaryEmbedding requires an even dim"

    # Deterministic "buffer" init, exactly as the PyTorch __init__, with the
    # cat([freqs, freqs]) pre-tiled to full width.
    inv_freq = 1.0 / (10000.0 ** (np.arange(0, dim, 2, dtype=np.float32) / np.float32(dim)))
    inv_freq_full = np.concatenate([inv_freq, inv_freq], axis=0).astype(np.float32)  # (dim,)

    flops = 2 * max_seq_len * dim
    out_bytes = max_seq_len * dim * 4

    lane_dense = (dim < 128) and (128 % dim == 0) and ((max_seq_len * dim) % 128 == 0)
    # TODO(synk): dims that are not 128-friendly (e.g. 96, 192) still take the
    # row-major path and emit partially masked lane stores.

    if lane_dense:
        # --- lane-dense path: (n, dim) viewed as an (n*dim/128, 128) slab ----
        k = 128 // dim
        total_rows = (max_seq_len * dim) // 128
        tile_r = _pick_tile_rows(total_rows, row_bytes=128 * 4)
        block_bytes = tile_r * 128 * 4

        lane = np.arange(128)
        lane_pos = (lane // dim).astype(np.float32)[None, :]               # (1, 128)
        lane_freq = inv_freq_full[lane % dim].astype(np.float32)[None, :]  # (1, 128)

        kernel = functools.partial(_rope_kernel_lanedense,
                                   tile_r=tile_r, k=k, offset=int(offset))
        out = pl.pallas_call(
            kernel,
            out_shape=jax.ShapeDtypeStruct((total_rows, 128), jnp.float32),
            grid=(pl.cdiv(total_rows, tile_r),),
            in_specs=[
                pl.BlockSpec((1, 128), lambda i: (0, 0)),
                pl.BlockSpec((1, 128), lambda i: (0, 0)),
            ],
            out_specs=pl.BlockSpec((tile_r, 128), lambda i: (i, 0)),
            compiler_params=pltpu.CompilerParams(
                dimension_semantics=("parallel",),
                vmem_limit_bytes=_vmem_limit_bytes(block_bytes)),
            cost_estimate=pl.CostEstimate(
                flops=flops, transcendentals=0,
                bytes_accessed=out_bytes + 2 * 128 * 4),
        )(jnp.asarray(lane_pos), jnp.asarray(lane_freq))
        return out.reshape(1, 1, max_seq_len, dim)

    # --- row-major path: seq on sublanes, feature dim on lanes ---------------
    tile_n = _pick_tile_rows(max_seq_len, row_bytes=dim * 4)
    block_bytes = tile_n * dim * 4
    kernel = functools.partial(_rope_kernel_rowmajor,
                               tile_n=tile_n, offset=int(offset))
    out = pl.pallas_call(
        kernel,
        out_shape=jax.ShapeDtypeStruct((max_seq_len, dim), jnp.float32),
        grid=(pl.cdiv(max_seq_len, tile_n),),
        in_specs=[pl.BlockSpec((1, dim), lambda i: (0, 0))],
        out_specs=pl.BlockSpec((tile_n, dim), lambda i: (i, 0)),
        compiler_params=pltpu.CompilerParams(
            dimension_semantics=("parallel",),
            vmem_limit_bytes=_vmem_limit_bytes(block_bytes)),
        cost_estimate=pl.CostEstimate(
            flops=flops, transcendentals=0,
            bytes_accessed=out_bytes + dim * 4),
    )(jnp.asarray(inv_freq_full[None, :], dtype=jnp.float32))
    return out.reshape(1, 1, max_seq_len, dim)


# ---------------------------------------------------------------------------
# Self-test
# ---------------------------------------------------------------------------

if __name__ == "__main__":
    # (PRNGKey present per spec; this module has no random tensor inputs.)
    _ = jax.random.PRNGKey(0)

    def _ref(max_seq_len, dim, offset):
        inv_freq_r = 1.0 / (10000.0 ** (np.arange(0, dim, 2, dtype=np.float32) / np.float32(dim)))
        seq_r = np.arange(max_seq_len, dtype=np.float32) + np.float32(offset)
        freqs_r = np.einsum("i,j->ij", seq_r, inv_freq_r)
        return np.concatenate([freqs_r, freqs_r], axis=-1)[None, None]

    # Small shapes consistent with the module (seq=8, hidden=32) -> lane-dense path.
    emb = jax.block_until_ready(rotary_embedding(8, 32, offset=3))
    assert emb.shape == (1, 1, 8, 32)
    np.testing.assert_allclose(np.asarray(emb), _ref(8, 32, 3), rtol=2e-6, atol=1e-6)

    # Lane-aligned case (dim=128, seq=2048) -> row-major path, 4-step parallel grid.
    emb2 = jax.block_until_ready(rotary_embedding(2048, 128, offset=0))
    assert emb2.shape == (1, 1, 2048, 128)
    np.testing.assert_allclose(np.asarray(emb2), _ref(2048, 128, 0), rtol=2e-6, atol=1e-6)

    # Ragged sequence length (not divisible by the 64-row tile) -> exercises the
    # cdiv grid with a masked last block (replaces the old full-extent fallback).
    emb3 = jax.block_until_ready(rotary_embedding(300, 128, offset=7))
    assert emb3.shape == (1, 1, 300, 128)
    np.testing.assert_allclose(np.asarray(emb3), _ref(300, 128, 7), rtol=2e-6, atol=1e-6)

    print("KERNEL_OK")
</pallas_src>

<mosaic_0001>
module attributes {stable_mosaic.version = 11 : i64} {
  func.func @_rope_kernel_lanedense(%arg0: i32, %arg1: memref<1x128xf32, #tpu.memory_space<vmem>>, %arg2: memref<1x128xf32, #tpu.memory_space<vmem>>, %arg3: memref<2x128xf32, #tpu.memory_space<vmem>>) attributes {dimension_semantics = [#tpu.dimension_semantics<parallel>], iteration_bounds = array<i64: 1>, scalar_prefetch = 0 : i64, scratch_operands = 0 : i64, tpu.core_type = #tpu.core_type<tc>, window_params = [{pipeline_mode = #tpu.pipeline_mode<synchronous>, transform_indices = @transform_0, window_bounds = array<i64: 1, 128>}, {pipeline_mode = #tpu.pipeline_mode<synchronous>, transform_indices = @transform_1, window_bounds = array<i64: 1, 128>}, {transform_indices = @transform_2, window_bounds = array<i64: 2, 128>}]} {
    %c8_i32 = arith.constant 8 : i32
    %0 = arith.muli %arg0, %c8_i32 : i32
    %c3_i32 = arith.constant 3 : i32
    %1 = arith.addi %0, %c3_i32 : i32
    %2 = arith.sitofp %1 : i32 to f32
    %c0 = arith.constant 0 : index
    %c0_0 = arith.constant 0 : index
    %3 = vector.load %arg1[%c0, %c0_0] : memref<1x128xf32, #tpu.memory_space<vmem>>, vector<1x128xf32>
    %4 = vector.broadcast %2 : f32 to vector<1x128xf32>
    %5 = arith.addf %4, %3 : vector<1x128xf32>
    %6 = tpu.iota {dimensions = array<i32: 0>} : vector<2x128xi32>
    %7 = arith.sitofp %6 : vector<2x128xi32> to vector<2x128xf32>
    %cst = arith.constant 4.000000e+00 : f32
    %8 = vector.broadcast %cst : f32 to vector<2x128xf32>
    %9 = arith.mulf %7, %8 : vector<2x128xf32>
    %10 = vector.broadcast %5 : vector<1x128xf32> to vector<2x128xf32>
    %11 = arith.addf %9, %10 : vector<2x128xf32>
    %c0_1 = arith.constant 0 : index
    %c0_2 = arith.constant 0 : index
    %12 = vector.load %arg2[%c0_1, %c0_2] : memref<1x128xf32, #tpu.memory_space<vmem>>, vector<1x128xf32>
    %13 = vector.broadcast %12 : vector<1x128xf32> to vector<2x128xf32>
    %14 = arith.mulf %11, %13 : vector<2x128xf32>
    %c0_3 = arith.constant 0 : index
    %c0_4 = arith.constant 0 : index
    %15 = vector.load %arg3[%c0_3, %c0_4] : memref<2x128xf32, #tpu.memory_space<vmem>>, vector<2x128xf32>
    tpu.vector_store %arg3[%c0_3, %c0_4], %14 {strides = array<i32>} : memref<2x128xf32, #tpu.memory_space<vmem>>, vector<2x128xf32>,
    return
  }
  func.func @transform_0(%arg0: i32) -> (i32, i32) {
    %c0_i32 = arith.constant 0 : i32
    %c0_i32_0 = arith.constant 0 : i32
    %c0_i32_1 = arith.constant 0 : i32
    return %c0_i32, %c0_i32_0 : i32, i32
  }
  func.func @transform_1(%arg0: i32) -> (i32, i32) {
    %c0_i32 = arith.constant 0 : i32
    %c0_i32_0 = arith.constant 0 : i32
    %c0_i32_1 = arith.constant 0 : i32
    return %c0_i32, %c0_i32_0 : i32, i32
  }
  func.func @transform_2(%arg0: i32) -> (i32, i32) {
    %c0_i32 = arith.constant 0 : i32
    %c0_i32_0 = arith.constant 0 : i32
    return %arg0, %c0_i32 : i32, i32
  }
}

</mosaic_0001>

<bundles_post_ra>
// kernel: tpu_custom_call.1
= control target key start
LH: loop header
LB: loop body
LE: loop exit
PB: predicated region body
PF: predicated region fallthrough
CT: control target
= control target key end

     0   :  { %7 = vsyncpa [#allocation3], 0  ;;  %s160_s0 = inlined_call_operand.hbm [shape: f32[1,128], index: 0, kind: input, shape index: {}]   ;;  %s161_s1 = inlined_call_operand.vmem [shape: f32[1,128], index: 1, kind: input, shape index: {}]   ;;  %s162_s2 = inlined_call_operand.hbm [shape: f32[2,128], index: 2, kind: output, shape index: {}]  }
   0x1   :  { %8 = vsyncpa [#allocation4], 0  ;;  %s116_s9 = smov [#allocation2]   ;;  %s68_s13 = scalar_lea.hbm %s160_s0, 16 }
   0x2   :  { %s15_s10 = sshll.u32 %s116_s9, 4  ;;  %p69_p0 = scmp.ne.s32.totalorder %s160_s0, %s68_s13  ;;  %s16_s10 = int_to_ptr.vmem [resolvable:$true] %s15_s10 }
   0x3   :  { %p72_p1 = scmp.lt.u32.totalorder %s68_s13, %s160_s0 }
   0x5   :  { %p74_p2 = pnand %p72_p1, %p69_p0 }
   0x7   :  { %77 = shalt.err (!%p74_p2)
}
   0x8   :  { %s78_s18 = scalar_lea.vmem %s16_s10, 16  ;;  %s82_s19 = scalar_lea.vmem %s16_s10, 32 }
   0x9   :  { %p79_p3 = scmp.ne.s32.totalorder %s16_s10, %s78_s18  ;;  %p83_p4 = scmp.lt.s32.totalorder %s16_s10, %s16_s10 }
   0xa   :  { %p84_p5 = scmp.lt.s32.totalorder %s82_s19, %s78_s18 }
   0xc   :  { %p85_p6 = por %p84_p5, %p83_p4 }
   0xe   :  { %p86_p7 = pnand %p85_p6, %p79_p3 }
  0x10   :  { %89 = shalt.err (!%p86_p7)
}
  0x11   :  { %18 = dma.hbm_to_vmem [thread:$0]  %s160_s0, 16, %s16_s10, [#allocation3]  }
  0x12   :  { %112 = dma.done.wait [#allocation3], 16  }
  0x13   :  { %113 = vsyncadd [#allocation3], 4294967280  ;;  %v30_v0 = vlaneseq  ;;  %v27_v4 = vld [vmem:[#allocation2] sm:$0x1]  ;;  %s117_s24 = smov [#allocation5]  }
  0x14   :  { %v29_v5 = vadd.f32 3.0, %v27_v4  ;;  %v65_v8 = vld [vmem:[%s161_s1] ss:$0 sm:$0xff]  ;;  %s56_s25 = sshll.u32 %s117_s24, 4  ;;  %s57_s25 = int_to_ptr.vmem [resolvable:$true] %s56_s25 }
  0x15   :  { %v31_v1 = vshrl.u32 %v30_v0, 7  ;;  %s90_s0 = scalar_lea.vmem %s57_s25, 32  ;;  %p95_p9 = scmp.lt.s32.totalorder %s57_s25, %s57_s25 }
  0x16   :  { %p91_p8 = scmp.ne.s32.totalorder %s57_s25, %s90_s0  ;;  %p96_p10 = scmp.lt.s32.totalorder %s90_s0, %s90_s0 }
  0x17   :  { %v32_v2 = vcvt.s32.f32 %v31_v1  ;;  %v37_v3 = vsub.s32 0, %v31_v1 }
  0x18   :  { %p97_p11 = por %p96_p10, %p95_p9 }
  0x19   :  { %v33_v6 = vmul.f32 4.0, %v32_v2  ;;  %v38_v7 = vrot.slane %v29_v5, %v37_v3 }
  0x1a   :  { %p98_p12 = pnand %p97_p11, %p91_p8 }
  0x1b   :  { %v40_v9 = vadd.f32 %v38_v7, %v33_v6 }
  0x1d   :  { %v48_v10 = vmul.f32 %v65_v8, %v40_v9 }
  0x1f   :  { %49 = vst [vmem:[#allocation5] sm:$0x3] %v48_v10 }
  0x20   :  { %101 = shalt.err (!%p98_p12)
}
  0x21   :  { %s102_s28 = scalar_lea.hbm %s162_s2, 32 }
  0x22   :  { %p103_p13 = scmp.ne.s32.totalorder %s162_s2, %s102_s28  ;;  %p106_p0 = scmp.lt.u32.totalorder %s102_s28, %s162_s2 }
  0x24   :  { %p108_p1 = pnand %p106_p0, %p103_p13 }
  0x26   :  { %111 = shalt.err (!%p108_p1)
}
  0x27   :  { %59 = dma.vmem_to_hbm [thread:$0]  %s57_s25, 32, %s162_s2, [#allocation4]  }
  0x28   :  { %114 = dma.done.wait [#allocation4], 32  }
  0x29   :  { %115 = vsyncadd [#allocation4], 4294967264 }
  0x2a   :  { %63 = vsyncpa [#allocation3], 1 }
  0x2b   :  { %64 = vsyncpa [#allocation4], 1 }

</bundles_post_ra>
